<compile_context>
chip_gen: v6e
topology: v6e:2x2x1
jax: 0.10.0
libtpu: 0.0.40
codegen_flags: <defaults>
</compile_context>

<pallas_src>
import functools

import jax
import jax.numpy as jnp
from jax import lax
from jax.experimental import pallas as pl
from jax.experimental.pallas import tpu as pltpu


def _sum_pool_kernel(x_ref, o_ref, acc_ref, *, seq_len, mask_seq):
    # x_ref: (TB, TS, TD), o_ref: (TB, TD), acc_ref: (TB, TD) f32 scratch.
    s = pl.program_id(2)

    @pl.when(s == 0)
    def _():
        acc_ref[...] = jnp.zeros_like(acc_ref)

    xv = x_ref[...]
    if mask_seq:
        # Zero out the out-of-range seq rows of the (partial) edge block.
        tb, ts, _ = x_ref.shape
        seq_ids = s * ts + lax.broadcasted_iota(jnp.int32, (tb, ts, 1), 1)
        xv = jnp.where(seq_ids < seq_len, xv, jnp.zeros_like(xv))

    # f32 accumulation regardless of input dtype (bf16-safe), no explicit
    # full-tile upcast.
    acc_ref[...] += jnp.sum(xv, axis=1, dtype=jnp.float32)

    @pl.when(s == pl.num_programs(2) - 1)
    def _():
        o_ref[...] = acc_ref[...].astype(o_ref.dtype)


def _masked_sum_pool_kernel(mask_ref, x_ref, o_ref, acc_ref, *, seq_len, mask_seq):
    # mask_ref: (TB, TS, 1) in x.dtype, x_ref: (TB, TS, TD), o/acc: (TB, TD).
    s = pl.program_id(2)

    @pl.when(s == 0)
    def _():
        acc_ref[...] = jnp.zeros_like(acc_ref)

    # Native-dtype VPU multiply (exact for 0/1 masks); f32 only in the
    # reduction accumulator -> no (TB,TS,TD) f32 temporary.
    prod = mask_ref[...] * x_ref[...]
    if mask_seq:
        # Mask the product (not just the mask): OOB rows of the edge block may
        # hold arbitrary stale data (0 * NaN would still poison the sum).
        tb, ts, _ = x_ref.shape
        seq_ids = s * ts + lax.broadcasted_iota(jnp.int32, (tb, ts, 1), 1)
        prod = jnp.where(seq_ids < seq_len, prod, jnp.zeros_like(prod))

    acc_ref[...] += jnp.sum(prod, axis=1, dtype=jnp.float32)

    @pl.when(s == pl.num_programs(2) - 1)
    def _():
        o_ref[...] = acc_ref[...].astype(o_ref.dtype)


def _round_up(v, m):
    return (v + m - 1) // m * m


def _cdiv(a, b):
    return (a + b - 1) // b


def sum_pooling(x, mask=None, *, seq_tile=None):
    """Pallas TPU implementation of SumPooling.forward.

    x:    (B, S, D)
    mask: (B, 1, S) or None (0/1 valid-token mask)
    returns (B, D) == torch.sum(x, dim=1)  /  torch.bmm(mask, x).squeeze(1)
    """
    B, S, D = x.shape
    dtype = x.dtype
    itemsize = jnp.dtype(dtype).itemsize

    # --- VMEM budget derived from the actual chip generation ----------------
    try:
        info = pltpu.get_tpu_info()
        vmem_cap = int(getattr(info, "vmem_capacity_bytes", 64 * 1024 * 1024))
    except Exception:  # pragma: no cover - conservative fallback
        vmem_cap = 64 * 1024 * 1024
    # v5e/v6e (128 MiB physical) -> 64 MiB scoped limit; v7x (64 MiB) -> 48 MiB.
    vmem_limit = int(min(64 * 1024 * 1024, (vmem_cap * 3) // 4))
    # Per x-tile budget: double-buffered x stays ~1/3 of the limit, leaving
    # headroom for the mask double-buffer, f32 accumulator and output block.
    budget = max(2 * 1024 * 1024, vmem_limit // 6)   # ~8 MiB (v7x) .. ~10.7 MiB

    # --- Tile selection (cdiv grids, no wrapper-side padding copy) ----------
    sub = max(8, 32 // max(1, itemsize))             # packed sublane unit: 8/16/32
    TB = B if B <= sub else sub

    # Embed tile: prefer full width (fewer grid steps, one contiguous TS*D DMA
    # run per batch row); fall back to lane-dense multiples of 128.
    per_td_bytes = TB * sub * itemsize               # bytes/embed-col at minimal seq tile
    if D <= 128 or per_td_bytes * D <= budget:
        TD = D
    else:
        TD = max(128, (budget // per_td_bytes) // 128 * 128)
        if TD >= D:
            TD = D
    # v7x has 2 TensorCores: keep >= 2 blocks on the parallel axes so the
    # megacore split has something to shard (negligible overhead on v5e/v6e).
    if _cdiv(B, TB) == 1 and TD == D and D >= 256:
        TD = _round_up(_cdiv(D, 2), 128)

    # Seq tile (reduction axis, innermost grid dim).
    if seq_tile is not None:
        TS = max(sub, _round_up(seq_tile, sub))
        TS = min(TS, _round_up(S, sub))
    else:
        ts_fit = max(sub, (budget // max(1, TB * TD * itemsize)) // sub * sub)
        TS = S if ts_fit >= S else ts_fit            # TS == S: full dim, no remainder
    mask_seq = (S % TS) != 0

    # Grow the batch tile if the x tile is still far below budget (hides the
    # ~0.35us fixed per-grid-step overhead), but keep >= 2 batch blocks when
    # possible so v7x's second core is not starved.
    if B > TB:
        tb_fit = (budget // max(1, TS * TD * itemsize)) // sub * sub
        tb_cap = max(sub, _round_up(_cdiv(B, 2), sub))
        TB = int(min(max(TB, tb_fit), tb_cap))

    grid = (_cdiv(B, TB), _cdiv(D, TD), _cdiv(S, TS))  # reduction axis innermost

    out_shape = jax.ShapeDtypeStruct((B, D), dtype)
    x_spec = pl.BlockSpec((TB, TS, TD), lambda b, d, s: (b, s, d))
    out_spec = pl.BlockSpec((TB, TD), lambda b, d, s: (b, d))
    scratch = [pltpu.VMEM((TB, TD), jnp.float32)]
    cparams = pltpu.CompilerParams(
        dimension_semantics=("parallel", "parallel", "arbitrary"),
        vmem_limit_bytes=vmem_limit,
    )

    if mask is None:
        kernel = functools.partial(_sum_pool_kernel, seq_len=S, mask_seq=mask_seq)
        return pl.pallas_call(
            kernel,
            out_shape=out_shape,
            grid_spec=pltpu.PrefetchScalarGridSpec(
                num_scalar_prefetch=0,
                grid=grid,
                in_specs=[x_spec],
                out_specs=out_spec,
                scratch_shapes=scratch,
            ),
            compiler_params=cparams,
        )(x)

    assert mask.shape == (B, 1, S)
    # (B,1,S) -> (B,S,1): seq lands on the sublane axis (last dim 1 == full dim).
    # Cast to x.dtype: exact for 0/1 masks.
    # TODO(synk): for fractional (non-binary) masks with bf16 x, keep the mask
    #             in f32 here (it is only (B,S,1)) to avoid bf16 weight loss.
    mask_t = jnp.swapaxes(mask, 1, 2).astype(dtype)
    mask_spec = pl.BlockSpec((TB, TS, 1), lambda b, d, s: (b, s, 0))
    kernel = functools.partial(_masked_sum_pool_kernel, seq_len=S, mask_seq=mask_seq)
    return pl.pallas_call(
        kernel,
        out_shape=out_shape,
        grid_spec=pltpu.PrefetchScalarGridSpec(
            num_scalar_prefetch=0,
            grid=grid,
            in_specs=[mask_spec, x_spec],
            out_specs=out_spec,
            scratch_shapes=scratch,
        ),
        compiler_params=cparams,
    )(mask_t, x)


if __name__ == "__main__":
    key = jax.random.PRNGKey(0)
    kx, km = jax.random.split(key)

    # Basic shapes from the module spec.
    B, S, D = 2, 8, 32
    x = jax.random.normal(kx, (B, S, D), dtype=jnp.float32)
    mask = (jax.random.uniform(km, (B, 1, S)) > 0.3).astype(jnp.float32)

    out_no_mask = jax.block_until_ready(sum_pooling(x, None))
    out_mask = jax.block_until_ready(sum_pooling(x, mask))

    ref_no_mask = jnp.sum(x, axis=1)
    ref_mask = jnp.einsum("bos,bsd->bod", mask, x)[:, 0, :]

    assert out_no_mask.shape == (B, D)
    assert out_mask.shape == (B, D)
    assert jnp.allclose(out_no_mask, ref_no_mask, atol=1e-5, rtol=1e-5)
    assert jnp.allclose(out_mask, ref_mask, atol=1e-5, rtol=1e-5)

    # Unaligned shapes + forced small seq tile: exercises cdiv grids, partial
    # edge blocks, and in-kernel masking of the seq remainder (no jnp.pad).
    B2, S2, D2 = 3, 20, 50
    kx2, km2 = jax.random.split(km)
    x2 = jax.random.normal(kx2, (B2, S2, D2), dtype=jnp.float32)
    mask2 = (jax.random.uniform(km2, (B2, 1, S2)) > 0.5).astype(jnp.float32)

    out2_nm = jax.block_until_ready(sum_pooling(x2, None, seq_tile=8))
    out2_m = jax.block_until_ready(sum_pooling(x2, mask2, seq_tile=8))
    ref2_nm = jnp.sum(x2, axis=1)
    ref2_m = jnp.einsum("bos,bsd->bod", mask2, x2)[:, 0, :]

    assert out2_nm.shape == (B2, D2)
    assert out2_m.shape == (B2, D2)
    assert jnp.allclose(out2_nm, ref2_nm, atol=1e-5, rtol=1e-5)
    assert jnp.allclose(out2_m, ref2_m, atol=1e-5, rtol=1e-5)

    # bf16 input with batch > sublane unit: exercises batch tiling with a
    # partial trailing batch block and the native-dtype masked multiply.
    B3, S3, D3 = 20, 32, 256
    kx3, km3 = jax.random.split(km2)
    x3 = jax.random.normal(kx3, (B3, S3, D3), dtype=jnp.bfloat16)
    mask3 = (jax.random.uniform(km3, (B3, 1, S3)) > 0.5).astype(jnp.bfloat16)

    out3_nm = jax.block_until_ready(sum_pooling(x3, None))
    out3_m = jax.block_until_ready(sum_pooling(x3, mask3))
    ref3_nm = jnp.sum(x3.astype(jnp.float32), axis=1)
    ref3_m = jnp.einsum(
        "bos,bsd->bod", mask3.astype(jnp.float32), x3.astype(jnp.float32)
    )[:, 0, :]

    assert out3_nm.shape == (B3, D3)
    assert out3_m.shape == (B3, D3)
    assert jnp.allclose(out3_nm.astype(jnp.float32), ref3_nm, atol=5e-2, rtol=5e-2)
    assert jnp.allclose(out3_m.astype(jnp.float32), ref3_m, atol=5e-2, rtol=5e-2)

    print("KERNEL_OK")
</pallas_src>

<mosaic_0001>
module attributes {stable_mosaic.version = 11 : i64} {
  func.func @_sum_pool_kernel(%arg0: i32, %arg1: i32, %arg2: i32, %arg3: memref<2x8x32xf32, #tpu.memory_space<vmem>>, %arg4: memref<2x32xf32, #tpu.memory_space<vmem>>, %arg5: memref<2x32xf32, #tpu.memory_space<vmem>>) attributes {dimension_semantics = [#tpu.dimension_semantics<parallel>, #tpu.dimension_semantics<parallel>, #tpu.dimension_semantics<arbitrary>], iteration_bounds = array<i64: 1, 1, 1>, scalar_prefetch = 0 : i64, scratch_operands = 1 : i64, tpu.core_type = #tpu.core_type<tc>, window_params = [{transform_indices = @transform_0, window_bounds = array<i64: 2, 8, 32>}, {transform_indices = @transform_1, window_bounds = array<i64: 2, 32>}]} {
    %c0_i32 = arith.constant 0 : i32
    %0 = arith.cmpi eq, %arg2, %c0_i32 : i32
    %1 = arith.extui %0 : i1 to i32
    %c0_i32_0 = arith.constant 0 : i32
    %2 = arith.cmpi ne, %1, %c0_i32_0 : i32
    scf.if %2 {
      %cst_9 = arith.constant 0.000000e+00 : f32
      %11 = vector.broadcast %cst_9 : f32 to vector<2x32xf32>
      %c0_10 = arith.constant 0 : index
      %c0_11 = arith.constant 0 : index
      %12 = vector.load %arg5[%c0_10, %c0_11] : memref<2x32xf32, #tpu.memory_space<vmem>>, vector<2x32xf32>
      tpu.vector_store %arg5[%c0_10, %c0_11], %11 {strides = array<i32>} : memref<2x32xf32, #tpu.memory_space<vmem>>, vector<2x32xf32>,
    } else {
    }
    %c0 = arith.constant 0 : index
    %c0_1 = arith.constant 0 : index
    %c0_2 = arith.constant 0 : index
    %3 = vector.load %arg3[%c0, %c0_1, %c0_2] : memref<2x8x32xf32, #tpu.memory_space<vmem>>, vector<2x8x32xf32>
    %c0_3 = arith.constant 0 : index
    %c0_4 = arith.constant 0 : index
    %4 = vector.load %arg5[%c0_3, %c0_4] : memref<2x32xf32, #tpu.memory_space<vmem>>, vector<2x32xf32>
    %cst = arith.constant dense<0.000000e+00> : vector<2x32xf32>
    %5 = vector.multi_reduction <add>, %3, %cst [1] : vector<2x8x32xf32> to vector<2x32xf32>
    %6 = arith.addf %4, %5 : vector<2x32xf32>
    %c0_5 = arith.constant 0 : index
    %c0_6 = arith.constant 0 : index
    %7 = vector.load %arg5[%c0_5, %c0_6] : memref<2x32xf32, #tpu.memory_space<vmem>>, vector<2x32xf32>
    tpu.vector_store %arg5[%c0_5, %c0_6], %6 {strides = array<i32>} : memref<2x32xf32, #tpu.memory_space<vmem>>, vector<2x32xf32>,
    %c0_i32_7 = arith.constant 0 : i32
    %8 = arith.cmpi eq, %arg2, %c0_i32_7 : i32
    %9 = arith.extui %8 : i1 to i32
    %c0_i32_8 = arith.constant 0 : i32
    %10 = arith.cmpi ne, %9, %c0_i32_8 : i32
    scf.if %10 {
      %c0_9 = arith.constant 0 : index
      %c0_10 = arith.constant 0 : index
      %11 = vector.load %arg5[%c0_9, %c0_10] : memref<2x32xf32, #tpu.memory_space<vmem>>, vector<2x32xf32>
      %c0_11 = arith.constant 0 : index
      %c0_12 = arith.constant 0 : index
      %12 = vector.load %arg4[%c0_11, %c0_12] : memref<2x32xf32, #tpu.memory_space<vmem>>, vector<2x32xf32>
      tpu.vector_store %arg4[%c0_11, %c0_12], %11 {strides = array<i32>} : memref<2x32xf32, #tpu.memory_space<vmem>>, vector<2x32xf32>,
    } else {
    }
    return
  }
  func.func @transform_0(%arg0: i32, %arg1: i32, %arg2: i32) -> (i32, i32, i32) {
    %c0_i32 = arith.constant 0 : i32
    return %arg0, %arg2, %arg1 : i32, i32, i32
  }
  func.func @transform_1(%arg0: i32, %arg1: i32, %arg2: i32) -> (i32, i32) {
    %c0_i32 = arith.constant 0 : i32
    return %arg0, %arg1 : i32, i32
  }
}

</mosaic_0001>

<bundles_post_ra>
// kernel: tpu_custom_call.1
= control target key start
LH: loop header
LB: loop body
LE: loop exit
PB: predicated region body
PF: predicated region fallthrough
CT: control target
= control target key end

     0   :  { %6 = vsyncpa [#allocation4], 0  ;;  %s148_s0 = inlined_call_operand.hbm [shape: f32[2,8,32], index: 0, kind: input, shape index: {}]   ;;  %s149_s1 = inlined_call_operand.hbm [shape: f32[2,32], index: 1, kind: output, shape index: {}]  }
   0x1   :  { %7 = vsyncpa [#allocation5], 0  ;;  %s124_s6 = smov [#allocation3]  }
   0x2   :  { %s13_s7 = sshll.u32 %s124_s6, 4  ;;  %s14_s7 = int_to_ptr.vmem [resolvable:$true] %s13_s7 }
   0x3   :  { %s88_s8 = scalar_lea.vmem %s14_s7, 256  ;;  %p93_p1 = scmp.lt.s32.totalorder %s14_s7, %s14_s7 }
   0x4   :  { %p89_p0 = scmp.ne.s32.totalorder %s14_s7, %s88_s8  ;;  %p94_p2 = scmp.lt.s32.totalorder %s88_s8, %s88_s8 }
   0x6   :  { %p95_p3 = por %p94_p2, %p93_p1 }
   0x8   :  { %p96_p4 = pnand %p95_p3, %p89_p0 }
   0xa   :  { %99 = shalt.err (!%p96_p4)
}
   0xb   :  { %s125_s9 = smov 128   ;;  %s126_s10 = smov 8  }
   0xc   :  { %19 = dma.hbm_to_vmem [thread:$0]  %s148_s0, 256, %s14_s7, [#allocation4], %s125_s9, %s125_s9, %s126_s10  }
   0xd   :  { %120 = dma.done.wait [#allocation4], 256  }
   0xe   :  { %121 = vsyncadd [#allocation4], 4294967040  ;;  %vm27_vm0 = vcmask 254976   ;;  %v127_v0 = vmov 0.0   ;;  %vm32_vm1 = vcmask 261120   ;;  %v29_v1 = vld [vmem:[#allocation3] sm:$0xff] }
   0xf   :  { %28 = vst.msk [vmem:[#allocation2] sm:$0x3] %vm27_vm0, %v127_v0  ;;  %v30_v2 = vld [vmem:[#allocation3 + $0x8] sm:$0xff]  ;;  %v33_v3 = vsel %vm32_vm1, %v29_v1, 0.0  ;;  %vm49_vm2 = vcmask 1041409   ;;  %s128_s0 = smov [#allocation6]  }
  0x10   :  { %v40_v4 = vsel %vm32_vm1, %v30_v2, 0.0  ;;  %v34_v5 = vrot.slane %v33_v3, 4  ;;  %s66_s13 = sshll.u32 %s128_s0, 4  ;;  %s67_s13 = int_to_ptr.vmem [resolvable:$true] %s66_s13 }
  0x11   :  { %v41_v6 = vrot.slane %v40_v4, 4  ;;  %s100_s14 = scalar_lea.vmem %s67_s13, 32  ;;  %p105_p6 = scmp.lt.s32.totalorder %s67_s13, %s67_s13 }
  0x12   :  { %v35_v7 = vadd.f32 %v34_v5, %v33_v3  ;;  %p101_p5 = scmp.ne.s32.totalorder %s67_s13, %s100_s14  ;;  %p106_p7 = scmp.lt.s32.totalorder %s100_s14, %s100_s14 }
  0x13   :  { %v42_v8 = vadd.f32 %v41_v6, %v40_v4 }
  0x14   :  { %v36_v9 = vrot.slane %v35_v7, 2  ;;  %p107_p8 = por %p106_p7, %p105_p6 }
  0x15   :  { %v43_v10 = vrot.slane %v42_v8, 2 }
  0x16   :  { %v37_v11 = vadd.f32 %v36_v9, %v35_v7  ;;  %v31_v15 = vld [vmem:[#allocation2] sm:$0x3]  ;;  %p108_p9 = pnand %p107_p8, %p101_p5 }
  0x17   :  { %v44_v12 = vadd.f32 %v43_v10, %v42_v8 }
  0x18   :  { %v38_v13 = vrot.slane %v37_v11, 1 }
  0x19   :  { %v45_v14 = vrot.slane %v44_v12, 1 }
  0x1a   :  { %v39_v16 = vadd.f32 %v38_v13, %v37_v11 }
  0x1b   :  { %v46_v17 = vadd.f32 %v45_v14, %v44_v12 }
  0x1d   :  { %v50_v18 = vsel %vm49_vm2, %v46_v17, %v39_v16 }
  0x1e   :  { %v52_v19 = vadd.f32 %v50_v18, %v31_v15 }
  0x20   :  { %54 = vst.msk [vmem:[#allocation2] sm:$0x3] %vm27_vm0, %v52_v19 }
  0x27   :  { %v58_v20 = vld [vmem:[#allocation2] sm:$0x3] }
  0x28   :  { %59 = vst.msk [vmem:[#allocation6] sm:$0x3] %vm27_vm0, %v58_v20 }
  0x29   :  { %111 = shalt.err (!%p108_p9)
}
  0x2a   :  { %69 = dma.vmem_to_hbm [thread:$0]  %s67_s13, 32, %s149_s1, [#allocation5]  }
  0x2b   :  { %122 = dma.done.wait [#allocation5], 32  }
  0x2c   :  { %123 = vsyncadd [#allocation5], 4294967264 }
  0x2d   :  { %73 = vsyncpa [#allocation4], 1 }
  0x2e   :  { %74 = vsyncpa [#allocation5], 1 }

</bundles_post_ra>
